<compile_context>
chip_gen: v7x
topology: tpu7x:2x2x1
jax: 0.10.0
libtpu: 0.0.40
codegen_flags: <defaults>
</compile_context>

<pallas_src>
import jax
import jax.numpy as jnp
from jax.experimental import pallas as pl
from jax.experimental.pallas import tpu as pltpu

_LANE = 128  # lane width of a vreg


def _copy_prefix_kernel(x_ref, o_ref):
    # Input block already holds exactly the kept W_out prefix: straight copy.
    o_ref[...] = x_ref[...]


def _slice_prefix_kernel(x_ref, o_ref):
    # Input block holds a 128-rounded (or full-W) prefix; keep W_out columns.
    o_ref[...] = x_ref[:, : o_ref.shape[-1]]


def _round_up(x, m):
    return -(-x // m) * m


def _vmem_capacity_bytes():
    """Physical VMEM of the current chip; conservative fallback if unknown."""
    try:
        return int(pltpu.get_tpu_info().vmem_capacity_bytes)
    except Exception:
        return 64 << 20  # v7x per-TensorCore physical VMEM (smallest of the three)


def _pick_tile_rows(n_rows, w_in_block, w_out, itemsize, budget_bytes):
    """Largest sublane-aligned row tile whose double-buffered in+out footprint
    fits the VMEM budget; guarantees >=2 grid steps when possible (megacore)."""
    align = max(8, 32 // itemsize)  # sublane tile: 8 f32 / 16 bf16 / 32 int8
    bytes_per_row = 2 * (w_in_block + w_out) * itemsize  # x2: double buffering
    tile = max(budget_bytes // bytes_per_row, align)
    tile = (tile // align) * align
    if n_rows > tile:
        return tile
    # Whole problem fits in one block: split into two grid steps so both of
    # v7x's TensorCores get work (harmless on single-core v5e/v6e).
    if n_rows >= 2 * align:
        half = _round_up(-(-n_rows // 2), align)
        if half < n_rows:
            return half
    return n_rows


def chomp1d(x: jax.Array, chomp_size: int) -> jax.Array:
    """Pallas equivalent of Chomp1d.forward: x[:, :, :, :-chomp_size]."""
    assert x.ndim == 4, "expected 4-D input [B, C, H, W]"
    # STWave always builds Chomp1d with chomp_size = padding > 0 (PyTorch's
    # `x[..., :-0]` would be empty anyway), so require a positive chomp.
    assert 0 < chomp_size < x.shape[-1]

    B, C, H, W = x.shape
    W_out = W - chomp_size
    R = B * C * H
    itemsize = x.dtype.itemsize

    # Collapse (B, C, H) into one row axis; reshape of a contiguous array is free.
    x2 = x.reshape(R, W)

    # Read only a 128-rounded prefix of each row: legal under the (8,128) rule
    # (last dim is either a multiple of 128 or the full array extent) and it
    # avoids streaming the chomped tail through HBM.
    w_in_block = min(W, _round_up(W_out, _LANE))
    kernel = _copy_prefix_kernel if w_in_block == W_out else _slice_prefix_kernel

    # Per-generation VMEM budget for the total double-buffered footprint.
    cap = _vmem_capacity_bytes()
    budget = min(cap // 4, 24 << 20)  # v7x -> 16 MiB, v5e/v6e -> 24 MiB

    tile_r = _pick_tile_rows(R, w_in_block, W_out, itemsize, budget)
    grid = (pl.cdiv(R, tile_r),)

    footprint = 2 * tile_r * (w_in_block + W_out) * itemsize
    vmem_limit = int(min(cap - (8 << 20), footprint + (4 << 20)))
    vmem_limit = max(vmem_limit, 16 << 20)

    cost = pl.CostEstimate(
        flops=0,
        transcendentals=0,
        bytes_accessed=R * (w_in_block + W_out) * itemsize,
    )

    out2 = pl.pallas_call(
        kernel,
        out_shape=jax.ShapeDtypeStruct((R, W_out), x.dtype),
        grid=grid,
        in_specs=[pl.BlockSpec((tile_r, w_in_block), lambda r: (r, 0))],
        out_specs=pl.BlockSpec((tile_r, W_out), lambda r: (r, 0)),
        compiler_params=pltpu.CompilerParams(
            dimension_semantics=("parallel",),
            vmem_limit_bytes=vmem_limit,
        ),
        cost_estimate=cost,
    )(x2)

    return out2.reshape(B, C, H, W_out)


if __name__ == "__main__":
    key = jax.random.PRNGKey(0)

    cases = [
        # (B, C, H, W, chomp) -> W_out = 13: narrow unaligned path (full-W read)
        (2, 4, 16, 16, 3),
        # W_out = 128: lane-aligned path; chomped tail is never read from HBM
        (2, 4, 16, 256, 128),
        # R = 1200: multi-row-tile grid with sublane-aligned split
        (3, 8, 50, 16, 3),
        # W_out = 340: unaligned but wide; reads a 384-column rounded prefix (< W)
        (2, 4, 16, 640, 300),
    ]

    ok = True
    for (B, C, H, W, chomp) in cases:
        key, sub = jax.random.split(key)
        x = jax.random.normal(sub, (B, C, H, W), dtype=jnp.float32)
        out = jax.block_until_ready(chomp1d(x, chomp))
        ref = x[:, :, :, :-chomp]
        ok &= out.shape == (B, C, H, W - chomp)
        ok &= bool(jnp.array_equal(out, ref))

    assert ok, "mismatch vs reference slice"
    print("KERNEL_OK")
</pallas_src>

<mosaic_0001>
module attributes {stable_mosaic.version = 11 : i64} {
  func.func @_slice_prefix_kernel(%arg0: i32, %arg1: memref<64x16xf32, #tpu.memory_space<vmem>>, %arg2: memref<64x13xf32, #tpu.memory_space<vmem>>) attributes {dimension_semantics = [#tpu.dimension_semantics<parallel>], iteration_bounds = array<i64: 2>, scalar_prefetch = 0 : i64, scratch_operands = 0 : i64, tpu.core_type = #tpu.core_type<tc>, window_params = [{transform_indices = @transform_0, window_bounds = array<i64: 64, 16>}, {transform_indices = @transform_1, window_bounds = array<i64: 64, 13>}]} {
    %c0 = arith.constant 0 : index
    %c0_0 = arith.constant 0 : index
    %0 = vector.load %arg1[%c0, %c0_0] : memref<64x16xf32, #tpu.memory_space<vmem>>, vector<64x13xf32>
    %c0_1 = arith.constant 0 : index
    %c0_2 = arith.constant 0 : index
    %1 = vector.load %arg2[%c0_1, %c0_2] : memref<64x13xf32, #tpu.memory_space<vmem>>, vector<64x13xf32>
    tpu.vector_store %arg2[%c0_1, %c0_2], %0 {strides = array<i32>} : memref<64x13xf32, #tpu.memory_space<vmem>>, vector<64x13xf32>,
    return
  }
  func.func @transform_0(%arg0: i32) -> (i32, i32) {
    %c0_i32 = arith.constant 0 : i32
    %c0_i32_0 = arith.constant 0 : i32
    return %arg0, %c0_i32 : i32, i32
  }
  func.func @transform_1(%arg0: i32) -> (i32, i32) {
    %c0_i32 = arith.constant 0 : i32
    %c0_i32_0 = arith.constant 0 : i32
    return %arg0, %c0_i32 : i32, i32
  }
}

</mosaic_0001>

<bundles_post_ra>
// kernel: tpu_custom_call.1
= control target key start
LH: loop header
LB: loop body
LE: loop exit
PB: predicated region body
PF: predicated region fallthrough
CT: control target
= control target key end

     0   :  { %s230_s6 = smov 0   ;;  %s255_s0 = inlined_call_operand.vmem [shape: f32[128,16], index: 0, kind: input, shape index: {}]   ;;  %s256_s1 = inlined_call_operand.vmem [shape: f32[128,13], index: 1, kind: output, shape index: {}]  }
   0x1 LB: > { %s193_s7 = sadd.s32 4294967295, %s218_s6   ;;  %p197_p0 = scmp.ge.s32.totalorder %s218_s6, 1  ;;  %s218_s6 = sphi %s230_s6, %s11_s6  }
   0x2   : > { %p88_p1 = scmp.lt.s32.totalorder %s218_s6, 3 }
   0x4   : > { %p89_p2 = pnand %p197_p0, %p88_p1 }
   0x5   : > { %s198_s8 = sshll.u32 (!%p89_p2), %s193_s7, 3  ;;  %vm128_vm0 = vcmask (!%p89_p2), 105472  }
   0x6   : > { %92 = sbr.rel (%p89_p2) target bundleno = 21 (0x15), region = 24  ;;  %p109_p3 = scmp.lt.s32.totalorder (!%p89_p2), %s198_s8, 15 }
   0xd   : > { %s258_s8 = smov (!%p109_p3, %s198_s8), 15 }
   0xe   : > { %s199_s9 = sshll.u32 %s258_s8, 3 }
   0xf   : > { %s112_s12 = scalar_lea.vmem %s255_s0, %s199_s9  ;;  %s118_s15 = scalar_lea.vmem %s256_s1, %s199_s9 }
  0x10   : > { %v120_v0 = vld [vmem:[%s112_s12] sm:$0xff]  ;;  %v121_v1 = vld [vmem:[%s112_s12 + $0x8] sm:$0xff]  ;;  %v122_v2 = vld [vmem:[%s112_s12 + $0x10] sm:$0xff] }
  0x11   : > { %129 = vst.msk [vmem:[%s118_s15] sm:$0xff] %vm128_vm0, %v120_v0  ;;  %130 = vst.msk [vmem:[%s118_s15 + $0x8] sm:$0xff] %vm128_vm0, %v121_v1  ;;  %v123_v3 = vld [vmem:[%s112_s12 + $0x18] sm:$0xff]  ;;  %v124_v4 = vld [vmem:[%s112_s12 + $0x20] sm:$0xff] }
  0x12   : > { %131 = vst.msk [vmem:[%s118_s15 + $0x10] sm:$0xff] %vm128_vm0, %v122_v2  ;;  %v125_v5 = vld [vmem:[%s112_s12 + $0x28] sm:$0xff]  ;;  %132 = vst.msk [vmem:[%s118_s15 + $0x18] sm:$0xff] %vm128_vm0, %v123_v3  ;;  %v126_v6 = vld [vmem:[%s112_s12 + $0x30] sm:$0xff] }
  0x13   : > { %133 = vst.msk [vmem:[%s118_s15 + $0x20] sm:$0xff] %vm128_vm0, %v124_v4  ;;  %134 = vst.msk [vmem:[%s118_s15 + $0x28] sm:$0xff] %vm128_vm0, %v125_v5  ;;  %v127_v7 = vld [vmem:[%s112_s12 + $0x38] sm:$0xff] }
  0x14   : > { %135 = vst.msk [vmem:[%s118_s15 + $0x30] sm:$0xff] %vm128_vm0, %v126_v6  ;;  %136 = vst.msk [vmem:[%s118_s15 + $0x38] sm:$0xff] %vm128_vm0, %v127_v7 }
  0x15 PF: > { %s11_s6 = sadd.s32 1, %s218_s6  }
  0x16   : > { %p8_p4 = scmp.ge.s32.totalorder %s11_s6, 4  }
  0x18   :  { %10 = sbr.rel (!%p8_p4) target bundleno = 1 (0x1), region = 54 }

</bundles_post_ra>
